<compile_context>
chip_gen: v7x
topology: tpu7x:2x2x1
jax: 0.10.0
libtpu: 0.0.40
codegen_flags: <defaults>
</compile_context>

<pallas_src>
import functools

import jax
import jax.numpy as jnp
from jax.experimental import pallas as pl
from jax.experimental.pallas import tpu as pltpu

IN_DIM = 6
HID_DIM = 32
OUT_DIM = 390
LANE = 128
OUT_PAD = ((OUT_DIM + LANE - 1) // LANE) * LANE  # 512


def _round_up(v, m):
    return (v + m - 1) // m * m


def mlp_kernel(x_ref, w1_ref, b1_ref, w2_ref, b2_ref, w3_ref, b3_ref, o_ref):
    # Full forward pass for one batch tile: two tanh-MLP layers + output proj.
    x = x_ref[...]                                                  # (TM, 6)
    h1 = jnp.tanh(
        jnp.dot(x, w1_ref[...], preferred_element_type=jnp.float32) + b1_ref[...]
    )                                                               # (TM, 32)
    h2 = jnp.tanh(
        jnp.dot(h1, w2_ref[...], preferred_element_type=jnp.float32) + b2_ref[...]
    )                                                               # (TM, 32)
    out = jnp.dot(h2, w3_ref[...], preferred_element_type=jnp.float32) + b3_ref[...]
    o_ref[...] = out.astype(o_ref.dtype)                            # (TM, 512)


@functools.partial(jax.jit, static_argnames=("block_b",))
def mlp_forward(x, params, block_b=None):
    w1, b1, w2, b2, w3, b3 = params
    B = x.shape[0]

    # Batch tile: multiple of 8 (sublane alignment), capped so double-buffered
    # (TM, 512) f32 output blocks fit the v7x 64 MiB VMEM budget with headroom.
    if block_b is None:
        block_b = min(1024, _round_up(B, 8))
    grid_b = pl.cdiv(B, block_b)

    # Lane-dense output path: zero-pad last-layer weight/bias to 512 lanes so
    # the kernel's output store is an unmasked full-width vst. Padded lanes are
    # exactly zero and sliced away below, so they never escape.
    w3p = jnp.pad(w3, ((0, 0), (0, OUT_PAD - OUT_DIM)))
    b3p = jnp.pad(b3, ((0, 0), (0, OUT_PAD - OUT_DIM)))

    resident = lambda arr: pl.BlockSpec(arr.shape, lambda i: (0, 0))

    out_padded = pl.pallas_call(
        mlp_kernel,
        out_shape=jax.ShapeDtypeStruct((B, OUT_PAD), jnp.float32),
        grid=(grid_b,),
        in_specs=[
            pl.BlockSpec((block_b, IN_DIM), lambda i: (i, 0)),   # x: tiled over batch
            resident(w1), resident(b1),                           # weights: VMEM-resident
            resident(w2), resident(b2),
            resident(w3p), resident(b3p),
        ],
        out_specs=pl.BlockSpec((block_b, OUT_PAD), lambda i: (i, 0)),
        compiler_params=pltpu.CompilerParams(
            dimension_semantics=("parallel",),
        ),
    )(x, w1, b1, w2, b2, w3p, b3p)

    return out_padded[:, :OUT_DIM]


def init_params(key):
    # Deterministic init mimicking PyTorch nn.Linear default:
    # U(-1/sqrt(fan_in), 1/sqrt(fan_in)) for both weight and bias.
    # Weights are stored transposed vs. PyTorch: (in_features, out_features).
    dims = [(IN_DIM, HID_DIM), (HID_DIM, HID_DIM), (HID_DIM, OUT_DIM)]
    params = []
    for (fan_in, fan_out) in dims:
        key, kw, kb = jax.random.split(key, 3)
        bound = 1.0 / jnp.sqrt(fan_in)
        w = jax.random.uniform(kw, (fan_in, fan_out), jnp.float32, -bound, bound)
        b = jax.random.uniform(kb, (1, fan_out), jnp.float32, -bound, bound)
        params.extend([w, b])
    return tuple(params)


def reference_forward(x, params):
    w1, b1, w2, b2, w3, b3 = params
    h1 = jnp.tanh(x @ w1 + b1)
    h2 = jnp.tanh(h1 @ w2 + b2)
    return h2 @ w3 + b3


if __name__ == "__main__":
    key = jax.random.PRNGKey(0)
    kx, kx2, kp = jax.random.split(key, 3)
    params = init_params(kp)

    # Case 1: tiny batch of observations (the RL use case), single grid step.
    B1 = 8
    x1 = jax.random.normal(kx, (B1, IN_DIM), dtype=jnp.float32)
    out1 = jax.block_until_ready(mlp_forward(x1, params))
    ref1 = reference_forward(x1, params)
    assert out1.shape == (B1, OUT_DIM), out1.shape
    assert jnp.allclose(out1, ref1, atol=2e-5, rtol=1e-5), "mismatch vs reference (B=8)"

    # Case 2: larger batch with an explicit small tile to exercise the batch
    # grid (multiple grid steps + a partial last tile).
    B2 = 300
    x2 = jax.random.normal(kx2, (B2, IN_DIM), dtype=jnp.float32)
    out2 = jax.block_until_ready(mlp_forward(x2, params, block_b=128))
    ref2 = reference_forward(x2, params)
    assert out2.shape == (B2, OUT_DIM), out2.shape
    assert jnp.allclose(out2, ref2, atol=2e-5, rtol=1e-5), "mismatch vs reference (B=300)"

    print("KERNEL_OK")
</pallas_src>

<mosaic_0001>
module attributes {stable_mosaic.version = 11 : i64} {
  func.func @mlp_kernel(%arg0: i32, %arg1: memref<8x6xf32, #tpu.memory_space<vmem>>, %arg2: memref<6x32xf32, #tpu.memory_space<vmem>>, %arg3: memref<1x32xf32, #tpu.memory_space<vmem>>, %arg4: memref<32x32xf32, #tpu.memory_space<vmem>>, %arg5: memref<1x32xf32, #tpu.memory_space<vmem>>, %arg6: memref<32x512xf32, #tpu.memory_space<vmem>>, %arg7: memref<1x512xf32, #tpu.memory_space<vmem>>, %arg8: memref<8x512xf32, #tpu.memory_space<vmem>>) attributes {dimension_semantics = [#tpu.dimension_semantics<parallel>], iteration_bounds = array<i64: 1>, scalar_prefetch = 0 : i64, scratch_operands = 0 : i64, tpu.core_type = #tpu.core_type<tc>, window_params = [{transform_indices = @transform_0, window_bounds = array<i64: 8, 6>}, {pipeline_mode = #tpu.pipeline_mode<synchronous>, transform_indices = @transform_1, window_bounds = array<i64: 6, 32>}, {pipeline_mode = #tpu.pipeline_mode<synchronous>, transform_indices = @transform_2, window_bounds = array<i64: 1, 32>}, {pipeline_mode = #tpu.pipeline_mode<synchronous>, transform_indices = @transform_3, window_bounds = array<i64: 32, 32>}, {pipeline_mode = #tpu.pipeline_mode<synchronous>, transform_indices = @transform_4, window_bounds = array<i64: 1, 32>}, {pipeline_mode = #tpu.pipeline_mode<synchronous>, transform_indices = @transform_5, window_bounds = array<i64: 32, 512>}, {pipeline_mode = #tpu.pipeline_mode<synchronous>, transform_indices = @transform_6, window_bounds = array<i64: 1, 512>}, {transform_indices = @transform_7, window_bounds = array<i64: 8, 512>}]} {
    %c0 = arith.constant 0 : index
    %c0_0 = arith.constant 0 : index
    %0 = vector.load %arg1[%c0, %c0_0] : memref<8x6xf32, #tpu.memory_space<vmem>>, vector<8x6xf32>
    %c0_1 = arith.constant 0 : index
    %c0_2 = arith.constant 0 : index
    %1 = vector.load %arg2[%c0_1, %c0_2] : memref<6x32xf32, #tpu.memory_space<vmem>>, vector<6x32xf32>
    %cst = arith.constant dense<0.000000e+00> : vector<8x32xf32>
    %2 = tpu.matmul %0, %1, %cst {dimension_numbers = #tpu.dot_dimension_numbers<[1], [0], [0], [1], [0, 0, 1, 1], [], []>} : vector<8x6xf32>, vector<6x32xf32>, vector<8x32xf32> -> vector<8x32xf32>
    %c0_3 = arith.constant 0 : index
    %c0_4 = arith.constant 0 : index
    %3 = vector.load %arg3[%c0_3, %c0_4] : memref<1x32xf32, #tpu.memory_space<vmem>>, vector<1x32xf32>
    %4 = vector.broadcast %3 : vector<1x32xf32> to vector<8x32xf32>
    %5 = arith.addf %2, %4 : vector<8x32xf32>
    %6 = math.tanh %5 : vector<8x32xf32>
    %c0_5 = arith.constant 0 : index
    %c0_6 = arith.constant 0 : index
    %7 = vector.load %arg4[%c0_5, %c0_6] : memref<32x32xf32, #tpu.memory_space<vmem>>, vector<32x32xf32>
    %cst_7 = arith.constant dense<0.000000e+00> : vector<8x32xf32>
    %8 = tpu.matmul %6, %7, %cst_7 {dimension_numbers = #tpu.dot_dimension_numbers<[1], [0], [0], [1], [0, 0, 1, 1], [], []>} : vector<8x32xf32>, vector<32x32xf32>, vector<8x32xf32> -> vector<8x32xf32>
    %c0_8 = arith.constant 0 : index
    %c0_9 = arith.constant 0 : index
    %9 = vector.load %arg5[%c0_8, %c0_9] : memref<1x32xf32, #tpu.memory_space<vmem>>, vector<1x32xf32>
    %10 = vector.broadcast %9 : vector<1x32xf32> to vector<8x32xf32>
    %11 = arith.addf %8, %10 : vector<8x32xf32>
    %12 = math.tanh %11 : vector<8x32xf32>
    %c0_10 = arith.constant 0 : index
    %c0_11 = arith.constant 0 : index
    %13 = vector.load %arg6[%c0_10, %c0_11] : memref<32x512xf32, #tpu.memory_space<vmem>>, vector<32x512xf32>
    %cst_12 = arith.constant dense<0.000000e+00> : vector<8x512xf32>
    %14 = tpu.matmul %12, %13, %cst_12 {dimension_numbers = #tpu.dot_dimension_numbers<[1], [0], [0], [1], [0, 0, 1, 1], [], []>} : vector<8x32xf32>, vector<32x512xf32>, vector<8x512xf32> -> vector<8x512xf32>
    %c0_13 = arith.constant 0 : index
    %c0_14 = arith.constant 0 : index
    %15 = vector.load %arg7[%c0_13, %c0_14] : memref<1x512xf32, #tpu.memory_space<vmem>>, vector<1x512xf32>
    %16 = vector.broadcast %15 : vector<1x512xf32> to vector<8x512xf32>
    %17 = arith.addf %14, %16 : vector<8x512xf32>
    %c0_15 = arith.constant 0 : index
    %c0_16 = arith.constant 0 : index
    %18 = vector.load %arg8[%c0_15, %c0_16] : memref<8x512xf32, #tpu.memory_space<vmem>>, vector<8x512xf32>
    tpu.vector_store %arg8[%c0_15, %c0_16], %17 {strides = array<i32>} : memref<8x512xf32, #tpu.memory_space<vmem>>, vector<8x512xf32>,
    return
  }
  func.func @transform_0(%arg0: i32) -> (i32, i32) {
    %c0_i32 = arith.constant 0 : i32
    %c0_i32_0 = arith.constant 0 : i32
    return %arg0, %c0_i32 : i32, i32
  }
  func.func @transform_1(%arg0: i32) -> (i32, i32) {
    %c0_i32 = arith.constant 0 : i32
    %c0_i32_0 = arith.constant 0 : i32
    %c0_i32_1 = arith.constant 0 : i32
    return %c0_i32, %c0_i32_0 : i32, i32
  }
  func.func @transform_2(%arg0: i32) -> (i32, i32) {
    %c0_i32 = arith.constant 0 : i32
    %c0_i32_0 = arith.constant 0 : i32
    %c0_i32_1 = arith.constant 0 : i32
    return %c0_i32, %c0_i32_0 : i32, i32
  }
  func.func @transform_3(%arg0: i32) -> (i32, i32) {
    %c0_i32 = arith.constant 0 : i32
    %c0_i32_0 = arith.constant 0 : i32
    %c0_i32_1 = arith.constant 0 : i32
    return %c0_i32, %c0_i32_0 : i32, i32
  }
  func.func @transform_4(%arg0: i32) -> (i32, i32) {
    %c0_i32 = arith.constant 0 : i32
    %c0_i32_0 = arith.constant 0 : i32
    %c0_i32_1 = arith.constant 0 : i32
    return %c0_i32, %c0_i32_0 : i32, i32
  }
  func.func @transform_5(%arg0: i32) -> (i32, i32) {
    %c0_i32 = arith.constant 0 : i32
    %c0_i32_0 = arith.constant 0 : i32
    %c0_i32_1 = arith.constant 0 : i32
    return %c0_i32, %c0_i32_0 : i32, i32
  }
  func.func @transform_6(%arg0: i32) -> (i32, i32) {
    %c0_i32 = arith.constant 0 : i32
    %c0_i32_0 = arith.constant 0 : i32
    %c0_i32_1 = arith.constant 0 : i32
    return %c0_i32, %c0_i32_0 : i32, i32
  }
  func.func @transform_7(%arg0: i32) -> (i32, i32) {
    %c0_i32 = arith.constant 0 : i32
    %c0_i32_0 = arith.constant 0 : i32
    return %arg0, %c0_i32 : i32, i32
  }
}

</mosaic_0001>

<bundles_post_ra>
// kernel: mlp_forward.1
= control target key start
LH: loop header
LB: loop body
LE: loop exit
PB: predicated region body
PF: predicated region fallthrough
CT: control target
= control target key end

     0   :  { %vm40_vm0 = vcmask 1045504   ;;  %v486_v2 = vmov 0.0   ;;  %vm487_vm1 = vmmov 0   ;;  %vm36_vm2 = vcmask 48128   ;;  %s620_s0 = inlined_call_operand.vmem [shape: f32[8,6], index: 0, kind: input, shape index: {}]   ;;  %s621_s1 = inlined_call_operand.vmem [shape: f32[6,32], index: 1, kind: input, shape index: {}]   ;;  %s622_s2 = inlined_call_operand.vmem [shape: f32[1,32], index: 2, kind: input, shape index: {}]   ;;  %s623_s3 = inlined_call_operand.vmem [shape: f32[32,32], index: 3, kind: input, shape index: {}]   ;;  %s624_s4 = inlined_call_operand.vmem [shape: f32[1,32], index: 4, kind: input, shape index: {}]   ;;  %s625_s5 = inlined_call_operand.vmem [shape: f32[32,512], index: 5, kind: input, shape index: {}]   ;;  %s626_s6 = inlined_call_operand.vmem [shape: f32[1,512], index: 6, kind: input, shape index: {}]   ;;  %s627_s7 = inlined_call_operand.hbm [shape: f32[8,512], index: 7, kind: output, shape index: {}]  }
   0x1   :  { %v28_v0 = vld [vmem:[%s621_s1] sm:$0x3f]  ;;  %416 = vmatprep.subr.mxu0 %v486_v2  ;;  %418 = vmatprep.mubr.msk.f32.mxu0 %vm487_vm1, %v486_v2 }
   0x2   :  { %v27_v1 = vld [vmem:[%s620_s0] sm:$0xff] }
   0x3   :  { %12 = vsyncpa [#allocation3], 0  ;;  %417 = vmatpush3.msk.msra.mxu0 %vm40_vm0, %v28_v0  ;;  %429 = vmatprep.mubr.msk.f32.mxu1 %vm487_vm1, %v486_v2  ;;  %v115_v3 = vld [vmem:[%s623_s3] sm:$0xff]  ;;  %v116_v4 = vld [vmem:[%s623_s3 + $0x8] sm:$0xff]  ;;  %v488_v6 = vmov 0.0|0.0   ;;  %vm126_vm3 = vcmask 261120   ;;  %v219_v44 = vlaneseq }
   0x4   :  { %419 = vmatmul.mubr.msk.f32.vlgmr.msra.gmra.mrb[0].mxu0 %vm36_vm2, %v27_v1  ;;  %v117_v5 = vld [vmem:[%s623_s3 + $0x10] sm:$0xff]  ;;  %432 = vmatprep.subr.bf16.mxu1 %v488_v6  ;;  %v433_v7 = vpack.c.bf16 %v116_v4, %v115_v3  ;;  %v118_v8 = vld [vmem:[%s623_s3 + $0x18] sm:$0xff]  ;;  %v402_v10 = vld [vmem:[%s622_s2] ss:$0 sm:$0xff] }
   0x5   :  { %306 = vmatprep.mubr.f32.mxu0 %v486_v2  ;;  %v436_v9 = vpack.c.bf16 %v118_v8, %v117_v5  ;;  %v202_v15 = vld [vmem:[%s625_s5 + $0x8] sm:$0xff]  ;;  %v204_v17 = vld [vmem:[%s625_s5 + $0x18] sm:$0xff]  ;;  %v201_v20 = vld [vmem:[%s625_s5] sm:$0xff]  ;;  %v220_v45 = vshrl.u32 %v219_v44, 7 }
   0x6   :  { %434 = vmatpush3.bf16.msra.mxu1 %v433_v7  ;;  %v206_v16 = vld [vmem:[%s625_s5 + $0x28] sm:$0xff]  ;;  %v208_v19 = vld [vmem:[%s625_s5 + $0x38] sm:$0xff]  ;;  %v205_v21 = vld [vmem:[%s625_s5 + $0x20] sm:$0xff] }
   0x7   :  { %435 = vmatprep.subr.bf16.mxu1 %v488_v6  ;;  %v438_v18 = vpack.c.bf16 %v206_v16, %v202_v15  ;;  %v446_v22 = vpack.c.bf16 %v208_v19, %v204_v17  ;;  %v440_v23 = vpack.c.bf16 %v205_v21, %v201_v20  ;;  %v203_v24 = vld [vmem:[%s625_s5 + $0x10] sm:$0xff]  ;;  %v210_v26 = vld [vmem:[%s625_s5 + $0x48] sm:$0xff]  ;;  %v212_v29 = vld [vmem:[%s625_s5 + $0x58] sm:$0xff]  ;;  %v221_v46 = vsub.s32 0, %v220_v45 }
   0x8   :  { %v207_v25 = vld [vmem:[%s625_s5 + $0x30] sm:$0xff]  ;;  %v214_v28 = vld [vmem:[%s625_s5 + $0x68] sm:$0xff]  ;;  %v216_v30 = vld [vmem:[%s625_s5 + $0x78] sm:$0xff]  ;;  %v229_v47 = vsub.s32 2, %v220_v45  ;;  %v225_v49 = vsub.s32 1, %v220_v45  ;;  %v233_v50 = vsub.s32 3, %v220_v45 }
   0x9   :  { %439 = vmatprep.subr.bf16.mxu0 %v438_v18  ;;  %v448_v27 = vpack.c.bf16 %v207_v25, %v203_v24  ;;  %v442_v31 = vpack.c.bf16 %v214_v28, %v210_v26  ;;  %v450_v32 = vpack.c.bf16 %v216_v30, %v212_v29  ;;  %v209_v33 = vld [vmem:[%s625_s5 + $0x40] sm:$0xff]  ;;  %v211_v35 = vld [vmem:[%s625_s5 + $0x50] sm:$0xff] }
   0xa   :  { %437 = vmatpush3.bf16.msra.mxu1 %v436_v9  ;;  %441 = vmatpush1.bf16.msra.mxu0 %v440_v23  ;;  %v213_v34 = vld [vmem:[%s625_s5 + $0x60] sm:$0xff]  ;;  %v215_v37 = vld [vmem:[%s625_s5 + $0x70] sm:$0xff] }
   0xb   :  { %447 = vmatprep.subr.bf16.mxu1 %v446_v22  ;;  %v444_v36 = vpack.c.bf16 %v213_v34, %v209_v33  ;;  %443 = vmatprep.subr.bf16.mxu0 %v442_v31  ;;  %v452_v38 = vpack.c.bf16 %v215_v37, %v211_v35  ;;  %v405_v39 = vld [vmem:[%s624_s4] ss:$0 sm:$0xff]  ;;  %s489_s4 = smov [#allocation2]  }
   0xc   :  { %v217_v48 = vld [vmem:[%s626_s6] sm:$0xf]  ;;  %s394_s19 = sshll.u32 %s489_s4, 4  ;;  %s395_s19 = int_to_ptr.vmem [resolvable:$true] %s394_s19 }
   0xd   :  { %v222_v51 = vrot.slane %v217_v48, %v221_v46  ;;  %v230_v52 = vrot.slane %v217_v48, %v229_v47  ;;  %v226_v53 = vrot.slane %v217_v48, %v225_v49  ;;  %v234_v54 = vrot.slane %v217_v48, %v233_v50  ;;  %s462_s6 = scalar_lea.vmem %s395_s19, 512  ;;  %p467_p1 = scmp.lt.s32.totalorder %s395_s19, %s395_s19 }
   0xe   :  { %445 = vmatpush1.bf16.msra.mxu0 %v444_v36  ;;  %p463_p0 = scmp.ne.s32.totalorder %s395_s19, %s462_s6  ;;  %p468_p2 = scmp.lt.s32.totalorder %s462_s6, %s462_s6 }
  0x10   :  { %p469_p3 = por %p468_p2, %p467_p1 }
  0x12   :  { %p470_p4 = pnand %p469_p3, %p463_p0 }
  0xd7   :  { %v110_v11 = vpop.f32.mrb[0].mxu0 }
  0xd8   :  { %v111_v12 = vadd.f32 %v402_v10, %v110_v11  ;;  %v420_v13 = vpop.f32.mrb[1].mxu0 }
  0xda   :  { %458 = vtanh.f32 %v111_v12 }
  0xe4   :  { %v459_v14 = vpop.eup %458 }
  0xe5   :  { %430 = vmatmul.mubr.msk.f32.vlgmr.msra.gmra.mrb[0].mxu1 %vm126_vm3, %v459_v14 }
  0xe6   :  { %377 = vmatprep.mubr.f32.mxu1 %v486_v2  ;;  %449 = vmatpush1.bf16.msra.mxu1 %v448_v27 }
  0xe7   :  { %451 = vmatprep.subr.bf16.mxu1 %v450_v32 }
  0xea   :  { %453 = vmatpush1.bf16.msra.mxu1 %v452_v38 }
 0x1b8   :  { %v196_v40 = vpop.f32.mrb[0].mxu1 }
 0x1b9   :  { %v197_v41 = vadd.f32 %v405_v39, %v196_v40  ;;  %v431_v42 = vpop.f32.mrb[1].mxu1 }
 0x1bb   :  { %460 = vtanh.f32 %v197_v41 }
 0x1c5   :  { %v461_v43 = vpop.eup %460 }
 0x1c6   :  { %407 = vmatmul.mubr.msk.f32.vlgmr.msra.gmra.mrb[2].mxu0 %vm126_vm3, %v461_v43  ;;  %408 = vmatmul.mubr.msk.f32.vlgmr.msra.gmra.mrb[2].mxu1 %vm126_vm3, %v461_v43 }
 0x299   :  { %v308_v55 = vpop.f32.mrb[2].mxu0  ;;  %v379_v56 = vpop.f32.mrb[2].mxu1 }
 0x29a   :  { %v309_v57 = vadd.f32 %v308_v55, %v222_v51  ;;  %v380_v58 = vadd.f32 %v379_v56, %v230_v52  ;;  %v310_v59 = vpop.f32.mrb[3].mxu0  ;;  %v381_v60 = vpop.f32.mrb[3].mxu1 }
 0x29b   :  { %v311_v61 = vadd.f32 %v310_v59, %v226_v53  ;;  %v382_v62 = vadd.f32 %v381_v60, %v234_v54 }
 0x29c   :  { %384 = vst [vmem:[#allocation2] sm:$0xff] %v309_v57  ;;  %386 = vst [vmem:[#allocation2 + $0x10] sm:$0xff] %v380_v58 }
 0x29d   :  { %385 = vst [vmem:[#allocation2 + $0x8] sm:$0xff] %v311_v61  ;;  %387 = vst [vmem:[#allocation2 + $0x18] sm:$0xff] %v382_v62 }
 0x29e   :  { %473 = shalt.err (!%p470_p4)
}
 0x29f   :  { %s474_s22 = scalar_lea.hbm %s627_s7, 512 }
 0x2a0   :  { %p475_p5 = scmp.ne.s32.totalorder %s627_s7, %s474_s22  ;;  %p478_p6 = scmp.lt.u32.totalorder %s474_s22, %s627_s7 }
 0x2a2   :  { %p480_p7 = pnand %p478_p6, %p475_p5 }
 0x2a4   :  { %483 = shalt.err (!%p480_p7)
}
 0x2a5   :  { %397 = dma.vmem_to_hbm [thread:$0]  %s395_s19, 512, %s627_s7, [#allocation3]  }
 0x2a6   :  { %484 = dma.done.wait [#allocation3], 512  }
 0x2a7   :  { %485 = vsyncadd [#allocation3], 4294966784 }
 0x2a8   :  { %401 = vsyncpa [#allocation3], 1 }

</bundles_post_ra>
